<compile_context>
chip_gen: v7x
topology: tpu7x:2x2x1
jax: 0.10.0
libtpu: 0.0.40
codegen_flags: <defaults>
</compile_context>

<pallas_src>
import functools

import jax
import jax.numpy as jnp
from jax.experimental import pallas as pl
from jax.experimental.pallas import tpu as pltpu

EPS = 1e-6
NEG_INF = -1e9


def _layer_norm(x, gamma, beta):
    mu = jnp.mean(x, axis=-1, keepdims=True)
    var = jnp.mean((x - mu) ** 2, axis=-1, keepdims=True)
    return gamma * (x - mu) * jax.lax.rsqrt(var + EPS) + beta


# ---------------- fused Pallas kernel ----------------

def encoder_layer_kernel(x_ref, inp_ref, mask_ref,
                         wqk_ref, wv_ref, wo_ref, w1_ref, b1_ref, w2_ref,
                         pack_ref, o_ref, *, num_heads, compute_dtype):
    x = x_ref[...]              # (N, H)  tokens of this batch-tile, f32
    inp = inp_ref[...]          # (N, H)
    mask_add = mask_ref[0]      # (N, N)  additive: 0 attend, <= -1e9 masked
    pack = pack_ref[...]        # (9, H)  packed biases / LayerNorm params, f32
    bq, bk, bv = pack[0:1], pack[1:2], pack[2:3]
    bo, b2 = pack[3:4], pack[4:5]
    g0, be0, g1, be1 = pack[5:6], pack[6:7], pack[7:8], pack[8:9]

    H = x.shape[-1]
    dk = H // num_heads
    cd = compute_dtype

    # ---------- sublayer 0: x + SelfAttn(LN(x), LN(x), inp, mask) ----------
    xn = _layer_norm(x, g0, be0)

    # Flat projections: single MXU passes. 1/sqrt(dk) already folded into wq/bq.
    qk = jnp.dot(xn.astype(cd), wqk_ref[...],
                 preferred_element_type=jnp.float32)              # (N, 2H)
    q = qk[:, :H] + bq                                            # (N, H) f32
    k = qk[:, H:] + bk                                            # (N, H) f32
    v = jnp.dot(inp.astype(cd), wv_ref[...],
                preferred_element_type=jnp.float32) + bv          # (N, H) f32

    # Per-head attention via static lane slices (heads stay lane-contiguous).
    ctx_heads = []
    for h in range(num_heads):
        sl = slice(h * dk, (h + 1) * dk)
        qh = q[:, sl].astype(cd)
        kh = k[:, sl].astype(cd)
        vh = v[:, sl].astype(cd)
        s = jnp.einsum('qd,kd->qk', qh, kh,
                       preferred_element_type=jnp.float32)        # (N, N) f32
        s = s + mask_add                                          # padding + cross-batch
        m = jnp.max(s, axis=-1, keepdims=True)
        p = jnp.exp(s - m)
        # denominator >= 1 (row max contributes exp(0)) -> approx recip is safe
        p = p * pl.reciprocal(jnp.sum(p, axis=-1, keepdims=True), approx=True)
        ctx_heads.append(jnp.dot(p.astype(cd), vh,
                                 preferred_element_type=jnp.float32))  # (N, dk)

    # Lane-major context (heads contiguous in lanes) -> one output matmul.
    ctx = jnp.concatenate(ctx_heads, axis=-1)                     # (N, H)
    attn_out = jnp.dot(ctx.astype(cd), wo_ref[...],
                       preferred_element_type=jnp.float32) + bo   # (N, H)
    y = x + attn_out        # dropout == identity (eval mode)

    # ---------- sublayer 1: y + FFN(LN(y)) ----------
    yn = _layer_norm(y, g1, be1)
    h1 = jnp.dot(yn.astype(cd), w1_ref[...],
                 preferred_element_type=jnp.float32) + b1_ref[...]
    h1 = jnp.maximum(h1, 0.0)
    h2 = jnp.dot(h1.astype(cd), w2_ref[...],
                 preferred_element_type=jnp.float32) + b2
    o_ref[...] = y + h2


# ---------------- wrapper ----------------

def encoder_layer(output, input_tensor, flag, params, *, num_heads,
                  compute_dtype=jnp.float32, batch_tile=None):
    B, S, H = output.shape
    dk = H // num_heads
    scale = dk ** -0.5

    if batch_tile is None:
        batch_tile = B          # fold whole batch into one grid step (v5e/v6e)
    assert B % batch_tile == 0
    num_tiles = B // batch_tile
    N = batch_tile * S          # tokens per grid step

    # ---- host-side packing ----
    # Q|K projection with 1/sqrt(dk) folded into the Q half.
    wqk = jnp.concatenate([params["wq"] * scale, params["wk"]],
                          axis=1).astype(compute_dtype)            # (H, 2H)
    wv = params["wv"].astype(compute_dtype)                        # (H, H)
    wo = params["wo"].astype(compute_dtype)                        # (H, H)
    w1 = params["w1"].astype(compute_dtype)                        # (H, Dff)
    w2 = params["w2"].astype(compute_dtype)                        # (Dff, H)
    b1 = params["b1"].astype(jnp.float32)                          # (1, Dff)
    # All H-wide biases / LayerNorm params packed into one (9, H) array.
    pack = jnp.concatenate([
        params["bq"] * scale, params["bk"], params["bv"], params["bo"],
        params["b2"], params["ln0_g"], params["ln0_b"],
        params["ln1_g"], params["ln1_b"],
    ], axis=0).astype(jnp.float32)                                 # (9, H)

    # Additive attention mask per batch-tile: key padding (from `flag`) plus a
    # block-diagonal cross-batch mask so several batches can share one softmax.
    key_add = (flag.reshape(B, S).astype(jnp.float32) - 1.0) * (-NEG_INF)  # 0 / -1e9
    key_add = key_add.reshape(num_tiles, N)                        # (T, N)
    bidx = jnp.arange(N) // S
    cross_add = jnp.where(bidx[:, None] == bidx[None, :], 0.0, NEG_INF)
    mask_add = cross_add[None].astype(jnp.float32) + key_add[:, None, :]   # (T, N, N)

    # Wrapper-side reshape: present activations as lane/sublane-dense 2-D slabs.
    x2 = output.reshape(B * S, H)
    inp2 = input_tensor.reshape(B * S, H)

    tok_spec = pl.BlockSpec((N, H), lambda t: (t, 0))
    mask_spec = pl.BlockSpec((1, N, N), lambda t: (t, 0, 0))

    def full(shape):            # whole-array block, constant across the grid
        nd = len(shape)
        return pl.BlockSpec(shape, lambda t, nd=nd: (0,) * nd)

    kernel = functools.partial(encoder_layer_kernel,
                               num_heads=num_heads, compute_dtype=compute_dtype)

    out2 = pl.pallas_call(
        kernel,
        out_shape=jax.ShapeDtypeStruct((B * S, H), jnp.float32),
        grid_spec=pltpu.PrefetchScalarGridSpec(
            num_scalar_prefetch=0,
            grid=(num_tiles,),
            in_specs=[
                tok_spec, tok_spec, mask_spec,
                full(wqk.shape), full(wv.shape), full(wo.shape),
                full(w1.shape), full(b1.shape), full(w2.shape),
                full(pack.shape),
            ],
            out_specs=tok_spec,
        ),
        compiler_params=pltpu.CompilerParams(dimension_semantics=("parallel",)),
    )(x2, inp2, mask_add, wqk, wv, wo, w1, b1, w2, pack)
    return out2.reshape(B, S, H)


# ---------------- pure-JAX reference (same math, for sanity check) ----------------

def encoder_layer_ref(x, inp, flag, p, *, num_heads):
    def ln(v, g, b):
        mu = v.mean(-1, keepdims=True)
        var = ((v - mu) ** 2).mean(-1, keepdims=True)
        return g * (v - mu) * jax.lax.rsqrt(var + EPS) + b

    B, S, H = x.shape
    dk = H // num_heads
    xn = ln(x, p["ln0_g"], p["ln0_b"])
    q = xn @ p["wq"] + p["bq"]
    k = xn @ p["wk"] + p["bk"]
    v = inp @ p["wv"] + p["bv"]
    q = q.reshape(B, S, num_heads, dk).transpose(0, 2, 1, 3)
    k = k.reshape(B, S, num_heads, dk).transpose(0, 2, 1, 3)
    v = v.reshape(B, S, num_heads, dk).transpose(0, 2, 1, 3)
    scores = jnp.einsum("bhqd,bhkd->bhqk", q, k) / jnp.sqrt(jnp.float32(dk))
    scores = jnp.where(flag[:, None, :, :] == 0.0, NEG_INF, scores)
    pattn = jax.nn.softmax(scores, axis=-1)
    o = jnp.einsum("bhqk,bhkd->bhqd", pattn, v).transpose(0, 2, 1, 3).reshape(B, S, H)
    y = x + (o @ p["wo"] + p["bo"])
    yn = ln(y, p["ln1_g"], p["ln1_b"])
    return y + (jnp.maximum(yn @ p["w1"] + p["b1"], 0.0) @ p["w2"] + p["b2"])


# ---------------- main ----------------

if __name__ == "__main__":
    B, S, H, Dff, NH = 2, 8, 32, 64, 4

    key = jax.random.PRNGKey(0)
    keys = jax.random.split(key, 16)

    def w(k, shape, scale=0.05):
        return (scale * jax.random.normal(k, shape)).astype(jnp.float32)

    params = {
        "wq": w(keys[0], (H, H)), "bq": w(keys[1], (1, H)),
        "wk": w(keys[2], (H, H)), "bk": w(keys[3], (1, H)),
        "wv": w(keys[4], (H, H)), "bv": w(keys[5], (1, H)),
        "wo": w(keys[6], (H, H)), "bo": w(keys[7], (1, H)),
        "w1": w(keys[8], (H, Dff)), "b1": w(keys[9], (1, Dff)),
        "w2": w(keys[10], (Dff, H)), "b2": w(keys[11], (1, H)),
        "ln0_g": jnp.ones((1, H), jnp.float32), "ln0_b": jnp.zeros((1, H), jnp.float32),
        "ln1_g": jnp.ones((1, H), jnp.float32), "ln1_b": jnp.zeros((1, H), jnp.float32),
    }

    output = jax.random.normal(keys[12], (B, S, H), dtype=jnp.float32)
    input_tensor = jax.random.normal(keys[13], (B, S, H), dtype=jnp.float32)
    # flag/mask: (B, 1, S); 1 = attend, 0 = masked.  Mask the tail of batch 1.
    flag = jnp.ones((B, 1, S), jnp.float32).at[1, 0, 6:].set(0.0)

    ref = encoder_layer_ref(output, input_tensor, flag, params, num_heads=NH)

    # f32 compute path, batch folded into one grid step (v5e/v6e default).
    out_f32 = encoder_layer(output, input_tensor, flag, params, num_heads=NH)
    out_f32 = jax.block_until_ready(out_f32)
    assert out_f32.shape == (B, S, H)
    assert jnp.allclose(out_f32, ref, atol=2e-3, rtol=2e-3), "f32 path mismatch vs reference"

    # bf16 matmul-operand path (v6e/v7x MXU fast path; f32 accumulation) — looser check.
    out_bf16 = encoder_layer(output, input_tensor, flag, params,
                             num_heads=NH, compute_dtype=jnp.bfloat16)
    out_bf16 = jax.block_until_ready(out_bf16)
    assert jnp.allclose(out_bf16, ref, atol=3e-2, rtol=3e-2), "bf16 path mismatch vs reference"

    # v7x-style path: grid=(B,) "parallel" so the two TensorCores each take a batch.
    out_tiled = encoder_layer(output, input_tensor, flag, params,
                              num_heads=NH, batch_tile=1)
    out_tiled = jax.block_until_ready(out_tiled)
    assert jnp.allclose(out_tiled, ref, atol=2e-3, rtol=2e-3), "batch-tiled path mismatch"

    print("KERNEL_OK")
</pallas_src>

<mosaic_0001>
module attributes {stable_mosaic.version = 11 : i64} {
  func.func @encoder_layer_kernel(%arg0: i32, %arg1: memref<16x32xf32, #tpu.memory_space<vmem>>, %arg2: memref<16x32xf32, #tpu.memory_space<vmem>>, %arg3: memref<1x16x16xf32, #tpu.memory_space<vmem>>, %arg4: memref<32x64xf32, #tpu.memory_space<vmem>>, %arg5: memref<32x32xf32, #tpu.memory_space<vmem>>, %arg6: memref<32x32xf32, #tpu.memory_space<vmem>>, %arg7: memref<32x64xf32, #tpu.memory_space<vmem>>, %arg8: memref<1x64xf32, #tpu.memory_space<vmem>>, %arg9: memref<64x32xf32, #tpu.memory_space<vmem>>, %arg10: memref<9x32xf32, #tpu.memory_space<vmem>>, %arg11: memref<16x32xf32, #tpu.memory_space<vmem>>) attributes {dimension_semantics = [#tpu.dimension_semantics<parallel>], iteration_bounds = array<i64: 1>, scalar_prefetch = 0 : i64, scratch_operands = 0 : i64, tpu.core_type = #tpu.core_type<tc>, window_params = [{transform_indices = @transform_0, window_bounds = array<i64: 16, 32>}, {transform_indices = @transform_1, window_bounds = array<i64: 16, 32>}, {transform_indices = @transform_2, window_bounds = array<i64: 1, 16, 16>}, {pipeline_mode = #tpu.pipeline_mode<synchronous>, transform_indices = @transform_3, window_bounds = array<i64: 32, 64>}, {pipeline_mode = #tpu.pipeline_mode<synchronous>, transform_indices = @transform_4, window_bounds = array<i64: 32, 32>}, {pipeline_mode = #tpu.pipeline_mode<synchronous>, transform_indices = @transform_5, window_bounds = array<i64: 32, 32>}, {pipeline_mode = #tpu.pipeline_mode<synchronous>, transform_indices = @transform_6, window_bounds = array<i64: 32, 64>}, {pipeline_mode = #tpu.pipeline_mode<synchronous>, transform_indices = @transform_7, window_bounds = array<i64: 1, 64>}, {pipeline_mode = #tpu.pipeline_mode<synchronous>, transform_indices = @transform_8, window_bounds = array<i64: 64, 32>}, {pipeline_mode = #tpu.pipeline_mode<synchronous>, transform_indices = @transform_9, window_bounds = array<i64: 9, 32>}, {transform_indices = @transform_10, window_bounds = array<i64: 16, 32>}]} {
    %c0 = arith.constant 0 : index
    %c0_0 = arith.constant 0 : index
    %0 = vector.load %arg1[%c0, %c0_0] : memref<16x32xf32, #tpu.memory_space<vmem>>, vector<16x32xf32>
    %c0_1 = arith.constant 0 : index
    %c0_2 = arith.constant 0 : index
    %1 = vector.load %arg2[%c0_1, %c0_2] : memref<16x32xf32, #tpu.memory_space<vmem>>, vector<16x32xf32>
    %c0_3 = arith.constant 0 : index
    %c0_4 = arith.constant 0 : index
    %c0_5 = arith.constant 0 : index
    %2 = vector.load %arg3[%c0_3, %c0_4, %c0_5] : memref<1x16x16xf32, #tpu.memory_space<vmem>>, vector<1x16x16xf32>
    %3 = vector.shape_cast %2 : vector<1x16x16xf32> to vector<16x16xf32>
    %c0_6 = arith.constant 0 : index
    %c0_7 = arith.constant 0 : index
    %4 = vector.load %arg10[%c0_6, %c0_7] : memref<9x32xf32, #tpu.memory_space<vmem>>, vector<9x32xf32>
    %5 = vector.extract_strided_slice %4 {offsets = [0, 0], sizes = [1, 32], strides = [1, 1]} : vector<9x32xf32> to vector<1x32xf32>
    %6 = vector.extract_strided_slice %4 {offsets = [1, 0], sizes = [1, 32], strides = [1, 1]} : vector<9x32xf32> to vector<1x32xf32>
    %7 = vector.extract_strided_slice %4 {offsets = [2, 0], sizes = [1, 32], strides = [1, 1]} : vector<9x32xf32> to vector<1x32xf32>
    %8 = vector.extract_strided_slice %4 {offsets = [3, 0], sizes = [1, 32], strides = [1, 1]} : vector<9x32xf32> to vector<1x32xf32>
    %9 = vector.extract_strided_slice %4 {offsets = [4, 0], sizes = [1, 32], strides = [1, 1]} : vector<9x32xf32> to vector<1x32xf32>
    %10 = vector.extract_strided_slice %4 {offsets = [5, 0], sizes = [1, 32], strides = [1, 1]} : vector<9x32xf32> to vector<1x32xf32>
    %11 = vector.extract_strided_slice %4 {offsets = [6, 0], sizes = [1, 32], strides = [1, 1]} : vector<9x32xf32> to vector<1x32xf32>
    %12 = vector.extract_strided_slice %4 {offsets = [7, 0], sizes = [1, 32], strides = [1, 1]} : vector<9x32xf32> to vector<1x32xf32>
    %13 = vector.extract_strided_slice %4 {offsets = [8, 0], sizes = [1, 32], strides = [1, 1]} : vector<9x32xf32> to vector<1x32xf32>
    %cst = arith.constant dense<0.000000e+00> : vector<16xf32>
    %14 = vector.multi_reduction <add>, %0, %cst [1] : vector<16x32xf32> to vector<16xf32>
    %15 = vector.shape_cast %14 : vector<16xf32> to vector<16x1xf32>
    %cst_8 = arith.constant 3.200000e+01 : f32
    %16 = vector.broadcast %cst_8 : f32 to vector<16x1xf32>
    %17 = arith.divf %15, %16 : vector<16x1xf32>
    %18 = vector.broadcast %17 : vector<16x1xf32> to vector<16x32xf32>
    %19 = arith.subf %0, %18 : vector<16x32xf32>
    %20 = arith.mulf %19, %19 : vector<16x32xf32>
    %cst_9 = arith.constant dense<0.000000e+00> : vector<16xf32>
    %21 = vector.multi_reduction <add>, %20, %cst_9 [1] : vector<16x32xf32> to vector<16xf32>
    %22 = vector.shape_cast %21 : vector<16xf32> to vector<16x1xf32>
    %cst_10 = arith.constant 3.200000e+01 : f32
    %23 = vector.broadcast %cst_10 : f32 to vector<16x1xf32>
    %24 = arith.divf %22, %23 : vector<16x1xf32>
    %25 = vector.broadcast %17 : vector<16x1xf32> to vector<16x32xf32>
    %26 = arith.subf %0, %25 : vector<16x32xf32>
    %27 = vector.broadcast %10 : vector<1x32xf32> to vector<16x32xf32>
    %28 = arith.mulf %27, %26 : vector<16x32xf32>
    %cst_11 = arith.constant 9.99999997E-7 : f32
    %29 = vector.broadcast %cst_11 : f32 to vector<16x1xf32>
    %30 = arith.addf %24, %29 : vector<16x1xf32>
    %31 = math.rsqrt %30 : vector<16x1xf32>
    %32 = vector.broadcast %31 : vector<16x1xf32> to vector<16x32xf32>
    %33 = arith.mulf %28, %32 : vector<16x32xf32>
    %34 = vector.broadcast %11 : vector<1x32xf32> to vector<16x32xf32>
    %35 = arith.addf %33, %34 : vector<16x32xf32>
    %c0_12 = arith.constant 0 : index
    %c0_13 = arith.constant 0 : index
    %36 = vector.load %arg4[%c0_12, %c0_13] : memref<32x64xf32, #tpu.memory_space<vmem>>, vector<32x64xf32>
    %cst_14 = arith.constant dense<0.000000e+00> : vector<16x64xf32>
    %37 = tpu.matmul %35, %36, %cst_14 {dimension_numbers = #tpu.dot_dimension_numbers<[1], [0], [0], [1], [0, 0, 1, 1], [], []>} : vector<16x32xf32>, vector<32x64xf32>, vector<16x64xf32> -> vector<16x64xf32>
    %38 = vector.extract_strided_slice %37 {offsets = [0, 0], sizes = [16, 32], strides = [1, 1]} : vector<16x64xf32> to vector<16x32xf32>
    %39 = vector.broadcast %5 : vector<1x32xf32> to vector<16x32xf32>
    %40 = arith.addf %38, %39 : vector<16x32xf32>
    %41 = vector.extract_strided_slice %37 {offsets = [0, 32], sizes = [16, 32], strides = [1, 1]} : vector<16x64xf32> to vector<16x32xf32>
    %42 = vector.broadcast %6 : vector<1x32xf32> to vector<16x32xf32>
    %43 = arith.addf %41, %42 : vector<16x32xf32>
    %c0_15 = arith.constant 0 : index
    %c0_16 = arith.constant 0 : index
    %44 = vector.load %arg5[%c0_15, %c0_16] : memref<32x32xf32, #tpu.memory_space<vmem>>, vector<32x32xf32>
    %cst_17 = arith.constant dense<0.000000e+00> : vector<16x32xf32>
    %45 = tpu.matmul %1, %44, %cst_17 {dimension_numbers = #tpu.dot_dimension_numbers<[1], [0], [0], [1], [0, 0, 1, 1], [], []>} : vector<16x32xf32>, vector<32x32xf32>, vector<16x32xf32> -> vector<16x32xf32>
    %46 = vector.broadcast %7 : vector<1x32xf32> to vector<16x32xf32>
    %47 = arith.addf %45, %46 : vector<16x32xf32>
    %48 = vector.extract_strided_slice %40 {offsets = [0, 0], sizes = [16, 8], strides = [1, 1]} : vector<16x32xf32> to vector<16x8xf32>
    %49 = vector.extract_strided_slice %43 {offsets = [0, 0], sizes = [16, 8], strides = [1, 1]} : vector<16x32xf32> to vector<16x8xf32>
    %50 = vector.extract_strided_slice %47 {offsets = [0, 0], sizes = [16, 8], strides = [1, 1]} : vector<16x32xf32> to vector<16x8xf32>
    "tpu.trace_start"() <{level = 10 : i32, message = "qd,kd->qk"}> : () -> ()
    %cst_18 = arith.constant dense<0.000000e+00> : vector<16x16xf32>
    %51 = tpu.matmul %48, %49, %cst_18 {dimension_numbers = #tpu.dot_dimension_numbers<[1], [1], [0], [0], [0, 0, 1, 0], [], []>} : vector<16x8xf32>, vector<16x8xf32>, vector<16x16xf32> -> vector<16x16xf32>
    "tpu.trace_stop"() : () -> ()
    %52 = arith.addf %51, %3 : vector<16x16xf32>
    %cst_19 = arith.constant dense<0xFF800000> : vector<16xf32>
    %53 = vector.multi_reduction <maximumf>, %52, %cst_19 [1] : vector<16x16xf32> to vector<16xf32>
    %54 = vector.shape_cast %53 : vector<16xf32> to vector<16x1xf32>
    %55 = vector.broadcast %54 : vector<16x1xf32> to vector<16x16xf32>
    %56 = arith.subf %52, %55 : vector<16x16xf32>
    %57 = math.exp %56 : vector<16x16xf32>
    %cst_20 = arith.constant dense<0.000000e+00> : vector<16xf32>
    %58 = vector.multi_reduction <add>, %57, %cst_20 [1] : vector<16x16xf32> to vector<16xf32>
    %59 = vector.shape_cast %58 : vector<16xf32> to vector<16x1xf32>
    %60 = tpu.reciprocal %59 {approx = true} : vector<16x1xf32> -> vector<16x1xf32>
    %61 = vector.broadcast %60 : vector<16x1xf32> to vector<16x16xf32>
    %62 = arith.mulf %57, %61 : vector<16x16xf32>
    %cst_21 = arith.constant dense<0.000000e+00> : vector<16x8xf32>
    %63 = tpu.matmul %62, %50, %cst_21 {dimension_numbers = #tpu.dot_dimension_numbers<[1], [0], [0], [1], [0, 0, 1, 1], [], []>} : vector<16x16xf32>, vector<16x8xf32>, vector<16x8xf32> -> vector<16x8xf32>
    %64 = vector.extract_strided_slice %40 {offsets = [0, 8], sizes = [16, 8], strides = [1, 1]} : vector<16x32xf32> to vector<16x8xf32>
    %65 = vector.extract_strided_slice %43 {offsets = [0, 8], sizes = [16, 8], strides = [1, 1]} : vector<16x32xf32> to vector<16x8xf32>
    %66 = vector.extract_strided_slice %47 {offsets = [0, 8], sizes = [16, 8], strides = [1, 1]} : vector<16x32xf32> to vector<16x8xf32>
    "tpu.trace_start"() <{level = 10 : i32, message = "qd,kd->qk"}> : () -> ()
    %cst_22 = arith.constant dense<0.000000e+00> : vector<16x16xf32>
    %67 = tpu.matmul %64, %65, %cst_22 {dimension_numbers = #tpu.dot_dimension_numbers<[1], [1], [0], [0], [0, 0, 1, 0], [], []>} : vector<16x8xf32>, vector<16x8xf32>, vector<16x16xf32> -> vector<16x16xf32>
    "tpu.trace_stop"() : () -> ()
    %68 = arith.addf %67, %3 : vector<16x16xf32>
    %cst_23 = arith.constant dense<0xFF800000> : vector<16xf32>
    %69 = vector.multi_reduction <maximumf>, %68, %cst_23 [1] : vector<16x16xf32> to vector<16xf32>
    %70 = vector.shape_cast %69 : vector<16xf32> to vector<16x1xf32>
    %71 = vector.broadcast %70 : vector<16x1xf32> to vector<16x16xf32>
    %72 = arith.subf %68, %71 : vector<16x16xf32>
    %73 = math.exp %72 : vector<16x16xf32>
    %cst_24 = arith.constant dense<0.000000e+00> : vector<16xf32>
    %74 = vector.multi_reduction <add>, %73, %cst_24 [1] : vector<16x16xf32> to vector<16xf32>
    %75 = vector.shape_cast %74 : vector<16xf32> to vector<16x1xf32>
    %76 = tpu.reciprocal %75 {approx = true} : vector<16x1xf32> -> vector<16x1xf32>
    %77 = vector.broadcast %76 : vector<16x1xf32> to vector<16x16xf32>
    %78 = arith.mulf %73, %77 : vector<16x16xf32>
    %cst_25 = arith.constant dense<0.000000e+00> : vector<16x8xf32>
    %79 = tpu.matmul %78, %66, %cst_25 {dimension_numbers = #tpu.dot_dimension_numbers<[1], [0], [0], [1], [0, 0, 1, 1], [], []>} : vector<16x16xf32>, vector<16x8xf32>, vector<16x8xf32> -> vector<16x8xf32>
    %80 = vector.extract_strided_slice %40 {offsets = [0, 16], sizes = [16, 8], strides = [1, 1]} : vector<16x32xf32> to vector<16x8xf32>
    %81 = vector.extract_strided_slice %43 {offsets = [0, 16], sizes = [16, 8], strides = [1, 1]} : vector<16x32xf32> to vector<16x8xf32>
    %82 = vector.extract_strided_slice %47 {offsets = [0, 16], sizes = [16, 8], strides = [1, 1]} : vector<16x32xf32> to vector<16x8xf32>
    "tpu.trace_start"() <{level = 10 : i32, message = "qd,kd->qk"}> : () -> ()
    %cst_26 = arith.constant dense<0.000000e+00> : vector<16x16xf32>
    %83 = tpu.matmul %80, %81, %cst_26 {dimension_numbers = #tpu.dot_dimension_numbers<[1], [1], [0], [0], [0, 0, 1, 0], [], []>} : vector<16x8xf32>, vector<16x8xf32>, vector<16x16xf32> -> vector<16x16xf32>
    "tpu.trace_stop"() : () -> ()
    %84 = arith.addf %83, %3 : vector<16x16xf32>
    %cst_27 = arith.constant dense<0xFF800000> : vector<16xf32>
    %85 = vector.multi_reduction <maximumf>, %84, %cst_27 [1] : vector<16x16xf32> to vector<16xf32>
    %86 = vector.shape_cast %85 : vector<16xf32> to vector<16x1xf32>
    %87 = vector.broadcast %86 : vector<16x1xf32> to vector<16x16xf32>
    %88 = arith.subf %84, %87 : vector<16x16xf32>
    %89 = math.exp %88 : vector<16x16xf32>
    %cst_28 = arith.constant dense<0.000000e+00> : vector<16xf32>
    %90 = vector.multi_reduction <add>, %89, %cst_28 [1] : vector<16x16xf32> to vector<16xf32>
    %91 = vector.shape_cast %90 : vector<16xf32> to vector<16x1xf32>
    %92 = tpu.reciprocal %91 {approx = true} : vector<16x1xf32> -> vector<16x1xf32>
    %93 = vector.broadcast %92 : vector<16x1xf32> to vector<16x16xf32>
    %94 = arith.mulf %89, %93 : vector<16x16xf32>
    %cst_29 = arith.constant dense<0.000000e+00> : vector<16x8xf32>
    %95 = tpu.matmul %94, %82, %cst_29 {dimension_numbers = #tpu.dot_dimension_numbers<[1], [0], [0], [1], [0, 0, 1, 1], [], []>} : vector<16x16xf32>, vector<16x8xf32>, vector<16x8xf32> -> vector<16x8xf32>
    %96 = vector.extract_strided_slice %40 {offsets = [0, 24], sizes = [16, 8], strides = [1, 1]} : vector<16x32xf32> to vector<16x8xf32>
    %97 = vector.extract_strided_slice %43 {offsets = [0, 24], sizes = [16, 8], strides = [1, 1]} : vector<16x32xf32> to vector<16x8xf32>
    %98 = vector.extract_strided_slice %47 {offsets = [0, 24], sizes = [16, 8], strides = [1, 1]} : vector<16x32xf32> to vector<16x8xf32>
    "tpu.trace_start"() <{level = 10 : i32, message = "qd,kd->qk"}> : () -> ()
    %cst_30 = arith.constant dense<0.000000e+00> : vector<16x16xf32>
    %99 = tpu.matmul %96, %97, %cst_30 {dimension_numbers = #tpu.dot_dimension_numbers<[1], [1], [0], [0], [0, 0, 1, 0], [], []>} : vector<16x8xf32>, vector<16x8xf32>, vector<16x16xf32> -> vector<16x16xf32>
    "tpu.trace_stop"() : () -> ()
    %100 = arith.addf %99, %3 : vector<16x16xf32>
    %cst_31 = arith.constant dense<0xFF800000> : vector<16xf32>
    %101 = vector.multi_reduction <maximumf>, %100, %cst_31 [1] : vector<16x16xf32> to vector<16xf32>
    %102 = vector.shape_cast %101 : vector<16xf32> to vector<16x1xf32>
    %103 = vector.broadcast %102 : vector<16x1xf32> to vector<16x16xf32>
    %104 = arith.subf %100, %103 : vector<16x16xf32>
    %105 = math.exp %104 : vector<16x16xf32>
    %cst_32 = arith.constant dense<0.000000e+00> : vector<16xf32>
    %106 = vector.multi_reduction <add>, %105, %cst_32 [1] : vector<16x16xf32> to vector<16xf32>
    %107 = vector.shape_cast %106 : vector<16xf32> to vector<16x1xf32>
    %108 = tpu.reciprocal %107 {approx = true} : vector<16x1xf32> -> vector<16x1xf32>
    %109 = vector.broadcast %108 : vector<16x1xf32> to vector<16x16xf32>
    %110 = arith.mulf %105, %109 : vector<16x16xf32>
    %cst_33 = arith.constant dense<0.000000e+00> : vector<16x8xf32>
    %111 = tpu.matmul %110, %98, %cst_33 {dimension_numbers = #tpu.dot_dimension_numbers<[1], [0], [0], [1], [0, 0, 1, 1], [], []>} : vector<16x16xf32>, vector<16x8xf32>, vector<16x8xf32> -> vector<16x8xf32>
    %112 = tpu.concatenate %63, %79, %95, %111 in 1 : vector<16x8xf32>, vector<16x8xf32>, vector<16x8xf32>, vector<16x8xf32> -> vector<16x32xf32>
    %c0_34 = arith.constant 0 : index
    %c0_35 = arith.constant 0 : index
    %113 = vector.load %arg6[%c0_34, %c0_35] : memref<32x32xf32, #tpu.memory_space<vmem>>, vector<32x32xf32>
    %cst_36 = arith.constant dense<0.000000e+00> : vector<16x32xf32>
    %114 = tpu.matmul %112, %113, %cst_36 {dimension_numbers = #tpu.dot_dimension_numbers<[1], [0], [0], [1], [0, 0, 1, 1], [], []>} : vector<16x32xf32>, vector<32x32xf32>, vector<16x32xf32> -> vector<16x32xf32>
    %115 = vector.broadcast %8 : vector<1x32xf32> to vector<16x32xf32>
    %116 = arith.addf %114, %115 : vector<16x32xf32>
    %117 = arith.addf %0, %116 : vector<16x32xf32>
    %cst_37 = arith.constant dense<0.000000e+00> : vector<16xf32>
    %118 = vector.multi_reduction <add>, %117, %cst_37 [1] : vector<16x32xf32> to vector<16xf32>
    %119 = vector.shape_cast %118 : vector<16xf32> to vector<16x1xf32>
    %cst_38 = arith.constant 3.200000e+01 : f32
    %120 = vector.broadcast %cst_38 : f32 to vector<16x1xf32>
    %121 = arith.divf %119, %120 : vector<16x1xf32>
    %122 = vector.broadcast %121 : vector<16x1xf32> to vector<16x32xf32>
    %123 = arith.subf %117, %122 : vector<16x32xf32>
    %124 = arith.mulf %123, %123 : vector<16x32xf32>
    %cst_39 = arith.constant dense<0.000000e+00> : vector<16xf32>
    %125 = vector.multi_reduction <add>, %124, %cst_39 [1] : vector<16x32xf32> to vector<16xf32>
    %126 = vector.shape_cast %125 : vector<16xf32> to vector<16x1xf32>
    %cst_40 = arith.constant 3.200000e+01 : f32
    %127 = vector.broadcast %cst_40 : f32 to vector<16x1xf32>
    %128 = arith.divf %126, %127 : vector<16x1xf32>
    %129 = vector.broadcast %121 : vector<16x1xf32> to vector<16x32xf32>
    %130 = arith.subf %117, %129 : vector<16x32xf32>
    %131 = vector.broadcast %12 : vector<1x32xf32> to vector<16x32xf32>
    %132 = arith.mulf %131, %130 : vector<16x32xf32>
    %cst_41 = arith.constant 9.99999997E-7 : f32
    %133 = vector.broadcast %cst_41 : f32 to vector<16x1xf32>
    %134 = arith.addf %128, %133 : vector<16x1xf32>
    %135 = math.rsqrt %134 : vector<16x1xf32>
    %136 = vector.broadcast %135 : vector<16x1xf32> to vector<16x32xf32>
    %137 = arith.mulf %132, %136 : vector<16x32xf32>
    %138 = vector.broadcast %13 : vector<1x32xf32> to vector<16x32xf32>
    %139 = arith.addf %137, %138 : vector<16x32xf32>
    %c0_42 = arith.constant 0 : index
    %c0_43 = arith.constant 0 : index
    %140 = vector.load %arg7[%c0_42, %c0_43] : memref<32x64xf32, #tpu.memory_space<vmem>>, vector<32x64xf32>
    %cst_44 = arith.constant dense<0.000000e+00> : vector<16x64xf32>
    %141 = tpu.matmul %139, %140, %cst_44 {dimension_numbers = #tpu.dot_dimension_numbers<[1], [0], [0], [1], [0, 0, 1, 1], [], []>} : vector<16x32xf32>, vector<32x64xf32>, vector<16x64xf32> -> vector<16x64xf32>
    %c0_45 = arith.constant 0 : index
    %c0_46 = arith.constant 0 : index
    %142 = vector.load %arg8[%c0_45, %c0_46] : memref<1x64xf32, #tpu.memory_space<vmem>>, vector<1x64xf32>
    %143 = vector.broadcast %142 : vector<1x64xf32> to vector<16x64xf32>
    %144 = arith.addf %141, %143 : vector<16x64xf32>
    %cst_47 = arith.constant 0.000000e+00 : f32
    %145 = vector.broadcast %cst_47 : f32 to vector<16x64xf32>
    %146 = arith.maximumf %144, %145 : vector<16x64xf32>
    %c0_48 = arith.constant 0 : index
    %c0_49 = arith.constant 0 : index
    %147 = vector.load %arg9[%c0_48, %c0_49] : memref<64x32xf32, #tpu.memory_space<vmem>>, vector<64x32xf32>
    %cst_50 = arith.constant dense<0.000000e+00> : vector<16x32xf32>
    %148 = tpu.matmul %146, %147, %cst_50 {dimension_numbers = #tpu.dot_dimension_numbers<[1], [0], [0], [1], [0, 0, 1, 1], [], []>} : vector<16x64xf32>, vector<64x32xf32>, vector<16x32xf32> -> vector<16x32xf32>
    %149 = vector.broadcast %9 : vector<1x32xf32> to vector<16x32xf32>
    %150 = arith.addf %148, %149 : vector<16x32xf32>
    %151 = arith.addf %117, %150 : vector<16x32xf32>
    %c0_51 = arith.constant 0 : index
    %c0_52 = arith.constant 0 : index
    %152 = vector.load %arg11[%c0_51, %c0_52] : memref<16x32xf32, #tpu.memory_space<vmem>>, vector<16x32xf32>
    tpu.vector_store %arg11[%c0_51, %c0_52], %151 {strides = array<i32>} : memref<16x32xf32, #tpu.memory_space<vmem>>, vector<16x32xf32>,
    return
  }
  func.func @transform_0(%arg0: i32) -> (i32, i32) {
    %c0_i32 = arith.constant 0 : i32
    %c0_i32_0 = arith.constant 0 : i32
    return %arg0, %c0_i32 : i32, i32
  }
  func.func @transform_1(%arg0: i32) -> (i32, i32) {
    %c0_i32 = arith.constant 0 : i32
    %c0_i32_0 = arith.constant 0 : i32
    return %arg0, %c0_i32 : i32, i32
  }
  func.func @transform_2(%arg0: i32) -> (i32, i32, i32) {
    %c0_i32 = arith.constant 0 : i32
    %c0_i32_0 = arith.constant 0 : i32
    %c0_i32_1 = arith.constant 0 : i32
    return %arg0, %c0_i32, %c0_i32_0 : i32, i32, i32
  }
  func.func @transform_3(%arg0: i32) -> (i32, i32) {
    %c0_i32 = arith.constant 0 : i32
    %c0_i32_0 = arith.constant 0 : i32
    %c0_i32_1 = arith.constant 0 : i32
    return %c0_i32, %c0_i32_0 : i32, i32
  }
  func.func @transform_4(%arg0: i32) -> (i32, i32) {
    %c0_i32 = arith.constant 0 : i32
    %c0_i32_0 = arith.constant 0 : i32
    %c0_i32_1 = arith.constant 0 : i32
    return %c0_i32, %c0_i32_0 : i32, i32
  }
  func.func @transform_5(%arg0: i32) -> (i32, i32) {
    %c0_i32 = arith.constant 0 : i32
    %c0_i32_0 = arith.constant 0 : i32
    %c0_i32_1 = arith.constant 0 : i32
    return %c0_i32, %c0_i32_0 : i32, i32
  }
  func.func @transform_6(%arg0: i32) -> (i32, i32) {
    %c0_i32 = arith.constant 0 : i32
    %c0_i32_0 = arith.constant 0 : i32
    %c0_i32_1 = arith.constant 0 : i32
    return %c0_i32, %c0_i32_0 : i32, i32
  }
  func.func @transform_7(%arg0: i32) -> (i32, i32) {
    %c0_i32 = arith.constant 0 : i32
    %c0_i32_0 = arith.constant 0 : i32
    %c0_i32_1 = arith.constant 0 : i32
    return %c0_i32, %c0_i32_0 : i32, i32
  }
  func.func @transform_8(%arg0: i32) -> (i32, i32) {
    %c0_i32 = arith.constant 0 : i32
    %c0_i32_0 = arith.constant 0 : i32
    %c0_i32_1 = arith.constant 0 : i32
    return %c0_i32, %c0_i32_0 : i32, i32
  }
  func.func @transform_9(%arg0: i32) -> (i32, i32) {
    %c0_i32 = arith.constant 0 : i32
    %c0_i32_0 = arith.constant 0 : i32
    %c0_i32_1 = arith.constant 0 : i32
    return %c0_i32, %c0_i32_0 : i32, i32
  }
  func.func @transform_10(%arg0: i32) -> (i32, i32) {
    %c0_i32 = arith.constant 0 : i32
    %c0_i32_0 = arith.constant 0 : i32
    return %arg0, %c0_i32 : i32, i32
  }
}

</mosaic_0001>

<bundles_post_ra>
// kernel: tpu_custom_call.1
= control target key start
LH: loop header
LB: loop body
LE: loop exit
PB: predicated region body
PF: predicated region fallthrough
CT: control target
= control target key end

     0   :  { %15 = vsyncpa [#allocation3], 0  ;;  %s2421_s0 = inlined_call_operand.hbm [shape: f32[16,32], index: 0, kind: input, shape index: {}]   ;;  %s2422_s1 = inlined_call_operand.hbm [shape: f32[16,32], index: 1, kind: input, shape index: {}]   ;;  %s2423_s2 = inlined_call_operand.hbm [shape: f32[1,16,16], index: 2, kind: input, shape index: {}]   ;;  %s2424_s3 = inlined_call_operand.vmem [shape: f32[32,64], index: 3, kind: input, shape index: {}]   ;;  %s2425_s4 = inlined_call_operand.vmem [shape: f32[32,32], index: 4, kind: input, shape index: {}]   ;;  %s2426_s5 = inlined_call_operand.vmem [shape: f32[32,32], index: 5, kind: input, shape index: {}]   ;;  %s2427_s6 = inlined_call_operand.hbm [shape: f32[32,64], index: 6, kind: input, shape index: {}]   ;;  %s2428_s7 = inlined_call_operand.vmem [shape: f32[1,64], index: 7, kind: input, shape index: {}]   ;;  %s2429_s8 = inlined_call_operand.vmem [shape: f32[64,32], index: 8, kind: input, shape index: {}]   ;;  %s2430_s9 = inlined_call_operand.vmem [shape: f32[9,32], index: 9, kind: input, shape index: {}]   ;;  %s2431_s10 = inlined_call_operand.hbm [shape: f32[16,32], index: 10, kind: output, shape index: {}]  }
   0x1   :  { %16 = vsyncpa [#allocation6], 0 }
   0x2   :  { %17 = vsyncpa [#allocation9], 0 }
   0x3   :  { %18 = vsyncpa [#allocation4], 0  ;;  %s2017_s13 = smov [#allocation5]   ;;  %s2018_s15 = smov [#allocation2]  }
   0x4   :  { %s36_s14 = sshll.u32 %s2017_s13, 4  ;;  %s24_s16 = sshll.u32 %s2018_s15, 4  ;;  %s37_s14 = int_to_ptr.vmem [resolvable:$true] %s36_s14  ;;  %s2089_s16 = int_to_ptr.vmem [resolvable:$true] %s24_s16 }
   0x5   :  { %s1899_s19 = scalar_lea.hbm %s2422_s1, 256 }
   0x6   :  { %p1900_p0 = scmp.ne.s32.totalorder %s2422_s1, %s1899_s19  ;;  %p1903_p1 = scmp.lt.u32.totalorder %s1899_s19, %s2422_s1 }
   0x8   :  { %p1905_p2 = pnand %p1903_p1, %p1900_p0 }
   0xa   :  { %1908 = shalt.err (!%p1905_p2)
}
   0xb   :  { %s1909_s24 = scalar_lea.vmem %s37_s14, 256  ;;  %p1914_p4 = scmp.lt.s32.totalorder %s37_s14, %s37_s14 }
   0xc   :  { %p1910_p3 = scmp.ne.s32.totalorder %s37_s14, %s1909_s24  ;;  %p1915_p5 = scmp.lt.s32.totalorder %s1909_s24, %s1909_s24 }
   0xe   :  { %p1916_p6 = por %p1915_p5, %p1914_p4 }
  0x10   :  { %p1917_p7 = pnand %p1916_p6, %p1910_p3 }
  0x12   :  { %1920 = shalt.err (!%p1917_p7)
}
  0x13   :  { %s2019_s25 = smov 128   ;;  %s2020_s26 = smov 8  }
  0x14   :  { %42 = dma.hbm_to_vmem [thread:$0]  %s2422_s1, 256, %s37_s14, [#allocation6], %s2019_s25, %s2019_s25, %s2020_s26  }
  0x15   :  { %s1921_s11 = scalar_lea.hbm %s2421_s0, 256 }
  0x16   :  { %p1922_p8 = scmp.ne.s32.totalorder %s2421_s0, %s1921_s11  ;;  %p1925_p9 = scmp.lt.u32.totalorder %s1921_s11, %s2421_s0 }
  0x18   :  { %p1927_p10 = pnand %p1925_p9, %p1922_p8 }
  0x1a   :  { %1930 = shalt.err (!%p1927_p10)
}
  0x1b   :  { %s1931_s18 = scalar_lea.vmem %s2089_s16, 256  ;;  %p1936_p12 = scmp.lt.s32.totalorder %s2089_s16, %s2089_s16 }
  0x1c   :  { %p1932_p11 = scmp.ne.s32.totalorder %s2089_s16, %s1931_s18  ;;  %p1937_p13 = scmp.lt.s32.totalorder %s1931_s18, %s1931_s18 }
  0x1e   :  { %p1938_p0 = por %p1937_p13, %p1936_p12 }
  0x20   :  { %p1939_p1 = pnand %p1938_p0, %p1932_p11 }
  0x22   :  { %1942 = shalt.err (!%p1939_p1)
}
  0x23   :  { %30 = dma.hbm_to_vmem [thread:$0]  %s2421_s0, 256, %s2089_s16, [#allocation3], %s2019_s25, %s2019_s25, %s2020_s26  }
  0x24   :  { %s2021_s19 = smov [#allocation7]   ;;  %s2022_s21 = smov [#allocation8]  }
  0x25   :  { %s48_s20 = sshll.u32 %s2021_s19, 4  ;;  %s66_s22 = sshll.u32 %s2022_s21, 4  ;;  %s49_s20 = int_to_ptr.vmem [resolvable:$true] %s48_s20  ;;  %s2126_s22 = int_to_ptr.vmem [resolvable:$true] %s66_s22 }
  0x26   :  { %s1943_s27 = scalar_lea.hbm %s2423_s2, 256 }
  0x27   :  { %p1944_p2 = scmp.ne.s32.totalorder %s2423_s2, %s1943_s27  ;;  %p1947_p3 = scmp.lt.u32.totalorder %s1943_s27, %s2423_s2 }
  0x29   :  { %p1949_p4 = pnand %p1947_p3, %p1944_p2 }
  0x2b   :  { %1952 = shalt.err (!%p1949_p4)
}
  0x2c   :  { %s1953_s0 = scalar_lea.vmem %s49_s20, 256  ;;  %p1958_p6 = scmp.lt.s32.totalorder %s49_s20, %s49_s20 }
  0x2d   :  { %p1954_p5 = scmp.ne.s32.totalorder %s49_s20, %s1953_s0  ;;  %p1959_p7 = scmp.lt.s32.totalorder %s1953_s0, %s1953_s0 }
  0x2f   :  { %p1960_p8 = por %p1959_p7, %p1958_p6 }
  0x31   :  { %p1961_p9 = pnand %p1960_p8, %p1954_p5 }
  0x33   :  { %1964 = shalt.err (!%p1961_p9)
}
  0x34   :  { %54 = dma.hbm_to_vmem [thread:$0]  %s2423_s2, 256, %s49_s20, [#allocation6], %s2019_s25, %s2019_s25, %s2020_s26  }
  0x35   :  { %s1965_s17 = scalar_lea.hbm %s2427_s6, 512 }
  0x36   :  { %p1966_p10 = scmp.ne.s32.totalorder %s2427_s6, %s1965_s17  ;;  %p1969_p11 = scmp.lt.u32.totalorder %s1965_s17, %s2427_s6 }
  0x38   :  { %p1971_p12 = pnand %p1969_p11, %p1966_p10 }
  0x3a   :  { %1974 = shalt.err (!%p1971_p12)
}
  0x3b   :  { %s1975_s21 = scalar_lea.vmem %s2126_s22, 512  ;;  %p1980_p0 = scmp.lt.s32.totalorder %s2126_s22, %s2126_s22 }
  0x3c   :  { %p1976_p13 = scmp.ne.s32.totalorder %s2126_s22, %s1975_s21  ;;  %p1981_p1 = scmp.lt.s32.totalorder %s1975_s21, %s1975_s21 }
  0x3e   :  { %p1982_p2 = por %p1981_p1, %p1980_p0 }
  0x40   :  { %p1983_p3 = pnand %p1982_p2, %p1976_p13 }
  0x42   :  { %1986 = shalt.err (!%p1983_p3)
}
  0x43   :  { %72 = dma.hbm_to_vmem [thread:$0]  %s2427_s6, 512, %s2126_s22, [#allocation9], %s2019_s25, %s2019_s25, %s2020_s26  }
  0x44   :  { %2009 = dma.done.wait [#allocation3], 256  }
  0x45   :  { %2010 = vsyncadd [#allocation3], 4294967040 }
  0x46   :  { %2011 = dma.done.wait [#allocation6], 512  }
  0x47   :  { %2012 = vsyncadd [#allocation6], 4294966784 }
  0x48   :  { %2013 = dma.done.wait [#allocation9], 512  }
  0x49   :  { %2014 = vsyncadd [#allocation9], 4294966784  ;;  %vm99_vm0 = vcmask 261120   ;;  %v2163_v0 = vld [vmem:[#allocation2] sm:$0xff]  ;;  %v2165_v1 = vld [vmem:[#allocation2 + $0x8] sm:$0xff]  ;;  %v121_v20 = vlaneseq  ;;  %s2023_s16 = smov 32  }
  0x4a   :  { %v100_v2 = vsel %vm99_vm0, %v2163_v0, 0.0  ;;  %v103_v3 = vsel %vm99_vm0, %v2165_v1, 0.0  ;;  %v139_v14 = vld [vmem:[%s2424_s3] sm:$0xff]  ;;  %v140_v15 = vld [vmem:[%s2424_s3 + $0x8] sm:$0xff]  ;;  %v141_v16 = vld [vmem:[%s2424_s3 + $0x10] sm:$0xff]  ;;  %vm335_vm1 = vcmask 64512  }
  0x4b   :  { %101 = vadd.xlane.f32.xlu0 %v100_v2  ;;  %v1719_v17 = vpack.c.bf16 %v140_v15, %v139_v14  ;;  %v142_v18 = vld [vmem:[%s2424_s3 + $0x18] sm:$0xff]  ;;  %v2187_v21 = vshrl.u32 %v121_v20, 7  ;;  %v2193_v23 = vld [vmem:[%s2430_s9] sm:$0xff]  ;;  %s2024_s3 = smov 96   ;;  %vm2215_vm2 = vmpackc.low %vm335_vm1, %vm335_vm1  ;;  %vm421_vm3 = vcmask 130048   ;;  %s2026_s21 = smov 88  }
  0x4c   :  { %v1723_v19 = vpack.c.bf16 %v142_v18, %v141_v16  ;;  %v240_v58 = vld [vmem:[%s2425_s4] sm:$0xff]  ;;  %v241_v59 = vld [vmem:[%s2425_s4 + $0x8] sm:$0xff]  ;;  %v242_v60 = vld [vmem:[%s2425_s4 + $0x10] sm:$0xff]  ;;  %s2027_s2 = smov 112   ;;  %s2028_s20 = smov 80   ;;  %vm1155_vm4 = vcmask 195584  }
  0x4d   :  { %1720 = vmatprep.subr.bf16.mxu1 %v1719_v17  ;;  %v232_v22 = vsub.s32 1, %v2187_v21  ;;  %v123_v30 = vsub.s32 5, %v2187_v21  ;;  %v135_v33 = vsub.s32 6, %v2187_v21  ;;  %v226_v43 = vsub.s32 0, %v2187_v21  ;;  %v243_v62 = vld [vmem:[%s2425_s4 + $0x18] sm:$0xff]  ;;  %v93_v63 = vld [vmem:[#allocation5] sm:$0xff] }
  0x4e   :  { %1722 = vmatpush3.bf16.msra.mxu1 %v1719_v17  ;;  %v1727_v61 = vpack.c.bf16 %v241_v59, %v240_v58  ;;  %v1731_v2 = vpack.c.bf16 %v243_v62, %v242_v60  ;;  %s2025_s4 = smov 120   ;;  %s2029_s6 = smov 104   ;;  %vm1393_vm5 = vcmask 523264  }
  0x4f   :  { %104 = vadd.xlane.f32.xlu0 %v103_v3  ;;  %1724 = vmatprep.subr.bf16.mxu1 %v1723_v19  ;;  %v233_v24 = vrot.slane %v2193_v23, %v232_v22  ;;  %v124_v32 = vrot.slane %v2193_v23, %v123_v30  ;;  %v136_v35 = vrot.slane %v2193_v23, %v135_v33  ;;  %v94_v3 = vld [vmem:[#allocation5 + $0x8] sm:$0xff]  ;;  %s2030_s22 = smov 72   ;;  %s2031_s23 = smov 16  }
  0x50   :  { %v227_v44 = vrot.slane %v2193_v23, %v226_v43 }
  0x52   :  { %1726 = vmatpush3.bf16.msra.mxu1 %v1723_v19 }
  0x53   :  { %1728 = vmatprep.subr.bf16.mxu1 %v1727_v61 }
  0x65   :  { %235 = vrot.lane.b32.xlu0 %v233_v24, %s2023_s16 }
  0xd8   :  { %v102_v4 = vpop.xlane.xlu0 %101 }
  0xd9   :  { %v107_v5 = vmul.f32 0.03125, %v102_v4  ;;  %v2239_v4 = vld [vmem:[#allocation7 + $0x8] sm:$0xff] }
  0xdb   :  { %v109_v6 = vsub.f32 %v2163_v0, %v107_v5  ;;  %v2241_v5 = vld [vmem:[#allocation7] sm:$0xff] }
  0xdc   :  { %v105_v7 = vpop.xlane.xlu0 %104 }
  0xdd   :  { %v108_v8 = vmul.f32 0.03125, %v105_v7  ;;  %v111_v9 = vmul.f32 %v109_v6, %v109_v6  ;;  %v125_v34 = vmul.f32 %v124_v32, %v109_v6 }
  0xdf   :  { %v110_v10 = vsub.f32 %v2165_v1, %v108_v8  ;;  %v113_v11 = vsel %vm99_vm0, %v111_v9, 0.0 }
  0xe0   :  { %114 = vadd.xlane.f32.xlu1 %v113_v11  ;;  %v236_v45 = vpop.permute.xlu0 %235 }
  0xe1   :  { %v112_v12 = vmul.f32 %v110_v10, %v110_v10  ;;  %v126_v38 = vmul.f32 %v124_v32, %v110_v10 }
  0xe3   :  { %v116_v13 = vsel %vm99_vm0, %v112_v12, 0.0 }
  0xe4   :  { %117 = vadd.xlane.f32.xlu1 %v116_v13 }
 0x16d   :  { %v115_v25 = vpop.xlane.xlu1 %114 }
 0x16e   :  { %v119_v26 = vmul.f32 0.03125, %v115_v25 }
 0x170   :  { %v127_v27 = vadd.f32 1e-06, %v119_v26  ;;  %v246_v26 = vsub.s32 2, %v2187_v21 }
 0x171   :  { %v118_v28 = vpop.xlane.xlu1 %117 }
 0x172   :  { %1859 = vrsqrt.f32 %v127_v27  ;;  %v120_v29 = vmul.f32 0.03125, %v118_v28  ;;  %v247_v27 = vrot.slane %v2193_v23, %v246_v26 }
 0x174   :  { %v128_v31 = vadd.f32 1e-06, %v120_v29 }
 0x176   :  { %1861 = vrsqrt.f32 %v128_v31 }
 0x17c   :  { %v1860_v36 = vpop.eup %1859 }
 0x17d   :  { %v131_v37 = vmul.f32 %v1860_v36, %v125_v34 }
 0x17f   :  { %v137_v39 = vadd.f32 %v136_v35, %v131_v37 }
 0x180   :  { %v1862_v40 = vpop.eup %1861 }
 0x181   :  { %v132_v41 = vmul.f32 %v1862_v40, %v126_v38  ;;  %1608 = vmatprep.mubr.msk.f32.mxu1 %vm99_vm0, %v137_v39 }
 0x183   :  { %v138_v42 = vadd.f32 %v136_v35, %v132_v41 }
 0x185   :  { %1609 = vmatmul.mubr.msk.f32.vlgmr.msra.gmra.mrb[0].mxu1 %vm99_vm0, %v138_v42 }
 0x186   :  { %1619 = vmatprep.mubr.msk.f32.mxu1 %vm99_vm0, %v93_v63  ;;  %1730 = vmatpush3.bf16.msra.mxu1 %v1727_v61 }
 0x187   :  { %1732 = vmatprep.subr.bf16.mxu1 %v1731_v2 }
 0x18a   :  { %1734 = vmatpush3.bf16.msra.mxu1 %v1731_v2 }
 0x18d   :  { %1620 = vmatmul.mubr.msk.f32.vlgmr.msra.gmra.mrb[2].mxu1 %vm99_vm0, %v94_v3 }
 0x258   :  { %v1610_v46 = vpop.f32.mrb[0].mxu1 }
 0x259   :  { %v2204_v47 = vadd.f32 %v1610_v46, %v227_v44  ;;  %v239_v48 = vadd.f32 %v1610_v46, %v236_v45  ;;  %v215_v49 = vpop.f32.mrb[1].mxu1 }
 0x25a   :  { %v2206_v50 = vadd.f32 %v227_v44, %v215_v49  ;;  %v238_v51 = vadd.f32 %v236_v45, %v215_v49 }
 0x25c   :  { %1626 = vmatprep.mubr.msk.f32.mxu0 %vm335_vm1, %v2206_v50  ;;  %v2210_v52 = vpack.i.bf16 %v239_v48, %v238_v51 }
 0x25e   :  { %1825 = vrot.lane.b32.xlu1 %v2210_v52, %s2024_s3  ;;  %s2032_s3 = smov 24  }
 0x260   :  { %v1621_v12 = vpop.f32.mrb[2].mxu1 }
 0x261   :  { %v320_v13 = vpop.f32.mrb[3].mxu1  ;;  %v326_v28 = vadd.f32 %v1621_v12, %v247_v27 }
 0x262   :  { %v321_v29 = vadd.f32 %v320_v13, %v247_v27 }
 0x264   :  { %v1741_v30 = vpack.c.bf16 %v326_v28, %v321_v29  ;;  %v2253_v31 = vpack.i.bf16 %v326_v28, %v321_v29 }
 0x266   :  { %1742 = vmatprep.subr.bf16.mxu1 %v1741_v30 }
 0x267   :  { %1744 = vmatpush3.bf16.msra.mxu1 %v1741_v30 }
 0x2d0   :  { %v1826_v53 = vpop.permute.xlu1 %1825 }
 0x2d1   :  { %v1828_v54 = vunpack.i.h.bf16 %v1826_v53  ;;  %v1827_v55 = vunpack.i.l.bf16 %v1826_v53 }
 0x2d3   :  { %v1735_v57 = vpack.c.bf16 %v1828_v54, %v1827_v55 }
 0x2d5   :  { %1737 = vmatprep.subr.msk.bf16.mxu0 %vm2215_vm2, %v1735_v57 }
 0x2d6   :  { %1740 = vmatpush3.bf16.xpose.msk.msra.mxu0 %vm2215_vm2, %v1735_v57 }
 0x2dd   :  { %1627 = vmatmul.mubr.msk.f32.vlgmr.msra.gmra.mrb[0].mxu0 %vm335_vm1, %v2204_v47 }
 0x3b0   :  { %v1628_v6 = vpop.f32.mrb[0].mxu0 }
 0x3b1   :  { %v418_v7 = vadd.f32 %v1628_v6, %v2239_v4  ;;  %v412_v8 = vpop.f32.mrb[1].mxu0 }
 0x3b2   :  { %v413_v9 = vadd.f32 %v412_v8, %v2241_v5 }
 0x3b3   :  { %v425_v10 = vsel %vm421_vm3, %v418_v7, -inf }
 0x3b4   :  { %426 = vmax.xlane.f32.xlu0 %v425_v10  ;;  %v422_v11 = vsel %vm421_vm3, %v413_v9, -inf }
 0x3b5   :  { %423 = vmax.xlane.f32.xlu1 %v422_v11 }
 0x441   :  { %v427_v14 = vpop.xlane.xlu0 %426 }
 0x442   :  { %v429_v15 = vsub.f32 %v418_v7, %v427_v14  ;;  %v424_v16 = vpop.xlane.xlu1 %423 }
 0x443   :  { %v428_v17 = vsub.f32 %v413_v9, %v424_v16 }
 0x444   :  { %v432_v18 = vmul.f32 1.442695, %v429_v15 }
 0x445   :  { %v430_v19 = vmul.f32 1.442695, %v428_v17 }
 0x446   :  { %1863 = vpow2.f32 %v432_v18 }
 0x447   :  { %1865 = vpow2.f32 %v430_v19 }
 0x450   :  { %v1864_v20 = vpop.eup %1863 }
 0x451   :  { %v1866_v22 = vpop.eup %1865  ;;  %v437_v24 = vsel %vm421_vm3, %v1864_v20, 0.0 }
 0x452   :  { %438 = vadd.xlane.f32.xlu1 %v437_v24  ;;  %v434_v25 = vsel %vm421_vm3, %v1866_v22, 0.0 }
 0x453   :  { %435 = vadd.xlane.f32.xlu0 %v434_v25 }
 0x463   :  { %525 = vrot.lane.b32.xlu1 %v2206_v50, %s2025_s4 }
 0x467   :  { %527 = vrot.lane.b32.xlu1 %v2204_v47, %s2025_s4 }
 0x469   :  { %1830 = vrot.lane.b32.xlu0 %v2210_v52, %s2026_s21 }
 0x4df   :  { %v439_v32 = vpop.xlane.xlu1 %438 }
 0x4e0   :  { %1867 = vrcp.f32 %v439_v32  ;;  %v436_v33 = vpop.xlane.xlu0 %435 }
 0x4e1   :  { %1869 = vrcp.f32 %v436_v33 }
 0x4e3   :  { %v526_v42 = vpop.permute.xlu1 %525 }
 0x4e4   :  { %v1831_v34 = vpop.permute.xlu0 %1830 }
 0x4e5   :  { %v1833_v35 = vunpack.i.h.bf16 %v1831_v34  ;;  %v1832_v36 = vunpack.i.l.bf16 %v1831_v34 }
 0x4e7   :  { %v1745_v37 = vpack.c.bf16 %v1833_v35, %v1832_v36  ;;  %v528_v43 = vpop.permute.xlu1 %527 }
 0x4e9   :  { %1747 = vmatprep.subr.msk.bf16.mxu1 %vm2215_vm2, %v1745_v37 }
 0x4ea   :  { %v1868_v38 = vpop.eup %1867 }
 0x4eb   :  { %v1870_v39 = vpop.eup %1869  ;;  %v443_v41 = vmul.f32 %v1868_v38, %v1864_v20 }
 0x4ec   :  { %v442_v40 = vmul.f32 %v1870_v39, %v1866_v22 }
 0x4ee   :  { %1633 = vmatprep.mubr.msk.f32.mxu1 %vm421_vm3, %v442_v40 }
 0x4ef   :  { %1634 = vmatmul.mubr.msk.f32.vlgmr.msra.gmra.mrb[4].mxu1 %vm421_vm3, %v443_v41 }
 0x4f0   :  { %1750 = vmatpush3.bf16.xpose.msk.msra.mxu1 %vm2215_vm2, %v1745_v37  ;;  %1640 = vmatprep.mubr.msk.f32.mxu1 %vm335_vm1, %v526_v42 }
 0x4f7   :  { %1641 = vmatmul.mubr.msk.f32.vlgmr.msra.gmra.mrb[6].mxu1 %vm335_vm1, %v528_v43 }
 0x5c2   :  { %v2266_v44 = vpop.f32.mrb[4].mxu1 }
 0x5c3   :  { %v2268_v45 = vpop.f32.mrb[5].mxu1 }
 0x5ca   :  { %v1642_v46 = vpop.f32.mrb[6].mxu1 }
 0x5cb   :  { %v613_v48 = vadd.f32 %v1642_v46, %v2239_v4  ;;  %v607_v49 = vpop.f32.mrb[7].mxu1 }
 0x5cc   :  { %v608_v51 = vadd.f32 %v607_v49, %v2241_v5 }
 0x5cd   :  { %v619_v53 = vsel %vm421_vm3, %v613_v48, -inf }
 0x5ce   :  { %620 = vmax.xlane.f32.xlu0 %v619_v53  ;;  %v616_v54 = vsel %vm421_vm3, %v608_v51, -inf }
 0x5cf   :  { %617 = vmax.xlane.f32.xlu1 %v616_v54 }
 0x5e0   :  { %1835 = vrot.lane.b32.xlu1 %v2253_v31, %s2025_s4 }
 0x5e4   :  { %727 = vrot.lane.b32.xlu1 %v2206_v50, %s2027_s2 }
 0x5e8   :  { %729 = vrot.lane.b32.xlu1 %v2204_v47, %s2027_s2 }
 0x65b   :  { %v621_v55 = vpop.xlane.xlu0 %620 }
 0x65c   :  { %v623_v57 = vsub.f32 %v613_v48, %v621_v55  ;;  %v618_v58 = vpop.xlane.xlu1 %617 }
 0x65d   :  { %v622_v59 = vsub.f32 %v608_v51, %v618_v58 }
 0x65e   :  { %v626_v60 = vmul.f32 1.442695, %v623_v57 }
 0x65f   :  { %v624_v61 = vmul.f32 1.442695, %v622_v59 }
 0x660   :  { %1871 = vpow2.f32 %v626_v60  ;;  %v1836_v62 = vpop.permute.xlu1 %1835 }
 0x661   :  { %v1838_v63 = vunpack.i.h.bf16 %v1836_v62  ;;  %v1837_v2 = vunpack.i.l.bf16 %v1836_v62  ;;  %1873 = vpow2.f32 %v624_v61 }
 0x663   :  { %v1751_v3 = vpack.c.bf16 %v1838_v63, %v1837_v2 }
 0x664   :  { %v728_v20 = vpop.permute.xlu1 %727 }
 0x665   :  { %1752 = vmatprep.subr.bf16.mxu0 %v1751_v3 }
 0x666   :  { %1754 = vmatpush3.bf16.msra.mxu0 %v1751_v3 }
 0x668   :  { %v730_v22 = vpop.permute.xlu1 %729 }
 0x66a   :  { %v1872_v6 = vpop.eup %1871 }
 0x66b   :  { %v631_v7 = vsel %vm421_vm3, %v1872_v6, 0.0  ;;  %v1874_v8 = vpop.eup %1873 }
 0x66c   :  { %632 = vadd.xlane.f32.xlu0 %v631_v7  ;;  %v628_v9 = vsel %vm421_vm3, %v1874_v8, 0.0 }
 0x670   :  { %629 = vadd.xlane.f32.xlu0 %v628_v9 }
 0x686   :  { %1840 = vrot.lane.b32.xlu0 %v2210_v52, %s2028_s20 }
 0x6f9   :  { %v633_v10 = vpop.xlane.xlu0 %632 }
 0x6fa   :  { %1875 = vrcp.f32 %v633_v10 }
 0x6fd   :  { %v630_v11 = vpop.xlane.xlu0 %629 }
 0x6fe   :  { %1877 = vrcp.f32 %v630_v11 }
 0x701   :  { %v1841_v12 = vpop.permute.xlu0 %1840 }
 0x702   :  { %v1843_v13 = vunpack.i.h.bf16 %v1841_v12  ;;  %v1842_v14 = vunpack.i.l.bf16 %v1841_v12 }
 0x704   :  { %v1755_v15 = vpack.c.bf16 %v1843_v13, %v1842_v14  ;;  %v1876_v16 = vpop.eup %1875 }
 0x705   :  { %v637_v19 = vmul.f32 %v1876_v16, %v1872_v6 }
 0x706   :  { %1757 = vmatprep.subr.msk.bf16.mxu0 %vm2215_vm2, %v1755_v15 }
 0x708   :  { %v1878_v17 = vpop.eup %1877 }
 0x709   :  { %v636_v18 = vmul.f32 %v1878_v17, %v1874_v8 }
 0x70b   :  { %1647 = vmatprep.mubr.msk.f32.mxu0 %vm421_vm3, %v636_v18 }
 0x70c   :  { %1648 = vmatmul.mubr.msk.f32.vlgmr.msra.gmra.mrb[2].mxu0 %vm421_vm3, %v637_v19 }
 0x70d   :  { %1760 = vmatpush3.bf16.xpose.msk.msra.mxu0 %vm2215_vm2, %v1755_v15  ;;  %1654 = vmatprep.mubr.msk.f32.mxu0 %vm335_vm1, %v728_v20 }
 0x714   :  { %1655 = vmatmul.mubr.msk.f32.vlgmr.msra.gmra.mrb[4].mxu0 %vm335_vm1, %v730_v22 }
 0x7df   :  { %v2291_v24 = vpop.f32.mrb[2].mxu0 }
 0x7e0   :  { %v2293_v25 = vpop.f32.mrb[3].mxu0 }
 0x7e7   :  { %v1656_v26 = vpop.f32.mrb[4].mxu0 }
 0x7e8   :  { %v815_v27 = vadd.f32 %v1656_v26, %v2239_v4  ;;  %v809_v28 = vpop.f32.mrb[5].mxu0 }
 0x7e9   :  { %v810_v29 = vadd.f32 %v809_v28, %v2241_v5 }
 0x7ea   :  { %v821_v30 = vsel %vm421_vm3, %v815_v27, -inf }
 0x7eb   :  { %822 = vmax.xlane.f32.xlu0 %v821_v30  ;;  %v818_v32 = vsel %vm421_vm3, %v810_v29, -inf  ;;  %v1160_v30 = vld [vmem:[%s2426_s5 + $0x10] sm:$0xff] }
 0x7ec   :  { %819 = vmax.xlane.f32.xlu1 %v818_v32 }
 0x7fd   :  { %1845 = vrot.lane.b32.xlu1 %v2253_v31, %s2027_s2 }
 0x801   :  { %927 = vrot.lane.b32.xlu1 %v2206_v50, %s2029_s6 }
 0x805   :  { %929 = vrot.lane.b32.xlu1 %v2204_v47, %s2029_s6 }
 0x878   :  { %v823_v33 = vpop.xlane.xlu0 %822 }
 0x879   :  { %v825_v34 = vsub.f32 %v815_v27, %v823_v33  ;;  %v820_v35 = vpop.xlane.xlu1 %819  ;;  %v1161_v33 = vld [vmem:[%s2426_s5 + $0x18] sm:$0xff] }
 0x87a   :  { %v824_v36 = vsub.f32 %v810_v29, %v820_v35  ;;  %v1158_v29 = vld [vmem:[%s2426_s5] sm:$0xff] }
 0x87b   :  { %v828_v37 = vmul.f32 1.442695, %v825_v34  ;;  %v1779_v34 = vpack.c.bf16 %v1161_v33, %v1160_v30 }
 0x87c   :  { %v826_v38 = vmul.f32 1.442695, %v824_v36 }
 0x87d   :  { %1879 = vpow2.f32 %v828_v37  ;;  %v1846_v39 = vpop.permute.xlu1 %1845 }
 0x87e   :  { %v1848_v40 = vunpack.i.h.bf16 %v1846_v39  ;;  %v1847_v41 = vunpack.i.l.bf16 %v1846_v39  ;;  %1881 = vpow2.f32 %v826_v38 }
 0x880   :  { %v1761_v42 = vpack.c.bf16 %v1848_v40, %v1847_v41 }
 0x881   :  { %v928_v61 = vpop.permute.xlu1 %927 }
 0x882   :  { %1762 = vmatprep.subr.bf16.mxu1 %v1761_v42 }
 0x883   :  { %1764 = vmatpush3.bf16.msra.mxu1 %v1761_v42 }
 0x887   :  { %v1880_v43 = vpop.eup %1879 }
 0x888   :  { %v833_v50 = vsel %vm421_vm3, %v1880_v43, 0.0  ;;  %v1882_v46 = vpop.eup %1881 }
 0x889   :  { %834 = vadd.xlane.f32.xlu0 %v833_v50  ;;  %v830_v47 = vsel %vm421_vm3, %v1882_v46, 0.0 }
 0x88d   :  { %831 = vadd.xlane.f32.xlu0 %v830_v47 }
 0x8a3   :  { %1850 = vrot.lane.b32.xlu0 %v2210_v52, %s2030_s22  ;;  %v930_v52 = vpop.permute.xlu1 %929 }
 0x916   :  { %v835_v48 = vpop.xlane.xlu0 %834 }
 0x917   :  { %1883 = vrcp.f32 %v835_v48 }
 0x91a   :  { %v832_v49 = vpop.xlane.xlu0 %831 }
 0x91b   :  { %1885 = vrcp.f32 %v832_v49 }
 0x91e   :  { %v1851_v51 = vpop.permute.xlu0 %1850 }
 0x91f   :  { %v1853_v53 = vunpack.i.h.bf16 %v1851_v51  ;;  %v1852_v54 = vunpack.i.l.bf16 %v1851_v51  ;;  %v1164_v51 = vsub.s32 3, %v2187_v21 }
 0x921   :  { %v1765_v55 = vpack.c.bf16 %v1853_v53, %v1852_v54  ;;  %v1884_v57 = vpop.eup %1883 }
 0x922   :  { %v839_v60 = vmul.f32 %v1884_v57, %v1880_v43 }
 0x923   :  { %1767 = vmatprep.subr.msk.bf16.mxu1 %vm2215_vm2, %v1765_v55 }
 0x925   :  { %v1886_v58 = vpop.eup %1885 }
 0x926   :  { %v838_v59 = vmul.f32 %v1886_v58, %v1882_v46 }
 0x928   :  { %1661 = vmatprep.mubr.msk.f32.mxu1 %vm421_vm3, %v838_v59 }
 0x929   :  { %1662 = vmatmul.mubr.msk.f32.vlgmr.msra.gmra.mrb[8].mxu1 %vm421_vm3, %v839_v60 }
 0x92a   :  { %1770 = vmatpush3.bf16.xpose.msk.msra.mxu1 %vm2215_vm2, %v1765_v55  ;;  %1668 = vmatprep.mubr.msk.f32.mxu1 %vm335_vm1, %v928_v61 }
 0x931   :  { %1669 = vmatmul.mubr.msk.f32.vlgmr.msra.gmra.mrb[10].mxu1 %vm335_vm1, %v930_v52 }
 0x9fc   :  { %v1663_v62 = vpop.f32.mrb[8].mxu1 }
 0x9fd   :  { %v918_v63 = vpop.f32.mrb[9].mxu1 }
 0xa04   :  { %v1670_v2 = vpop.f32.mrb[10].mxu1 }
 0xa05   :  { %v1015_v3 = vadd.f32 %v1670_v2, %v2239_v4  ;;  %v1009_v6 = vpop.f32.mrb[11].mxu1 }
 0xa06   :  { %v1010_v7 = vadd.f32 %v1009_v6, %v2241_v5 }
 0xa07   :  { %v1021_v8 = vsel %vm421_vm3, %v1015_v3, -inf }
 0xa08   :  { %1022 = vmax.xlane.f32.xlu0 %v1021_v8  ;;  %v1018_v9 = vsel %vm421_vm3, %v1010_v7, -inf  ;;  %v1287_v8 = vld [vmem:[#allocation8] sm:$0xff] }
 0xa09   :  { %1019 = vmax.xlane.f32.xlu1 %v1018_v9  ;;  %v1288_v9 = vld [vmem:[#allocation8 + $0x8] sm:$0xff] }
 0xa1a   :  { %1855 = vrot.lane.b32.xlu1 %v2253_v31, %s2029_s6 }
 0xa1e   :  { %1131 = vrot.lane.b32.xlu1 %v2291_v24, %s2020_s26 }
 0xa22   :  { %1137 = vrot.lane.b32.xlu1 %v918_v63, %s2031_s23 }
 0xa26   :  { %1139 = vrot.lane.b32.xlu1 %v1663_v62, %s2031_s23 }
 0xa95   :  { %v1023_v56 = vpop.xlane.xlu0 %1022 }
 0xa96   :  { %v1025_v4 = vsub.f32 %v1015_v3, %v1023_v56  ;;  %v1020_v10 = vpop.xlane.xlu1 %1019  ;;  %v1289_v56 = vld [vmem:[#allocation8 + $0x10] sm:$0xff] }
 0xa97   :  { %v1024_v11 = vsub.f32 %v1010_v7, %v1020_v10  ;;  %v1290_v10 = vld [vmem:[#allocation8 + $0x18] sm:$0xff] }
 0xa98   :  { %v1028_v5 = vmul.f32 1.442695, %v1025_v4  ;;  %v1783_v4 = vpack.c.bf16 %v1288_v9, %v1287_v8 }
 0xa99   :  { %v1026_v12 = vmul.f32 1.442695, %v1024_v11  ;;  %v1787_v11 = vpack.c.bf16 %v1290_v10, %v1289_v56 }
 0xa9a   :  { %v1856_v13 = vpop.permute.xlu1 %1855  ;;  %1784 = vmatprep.subr.bf16.mxu1 %v1783_v4 }
 0xa9b   :  { %1887 = vpow2.f32 %v1026_v12  ;;  %v1858_v14 = vunpack.i.h.bf16 %v1856_v13  ;;  %v1857_v15 = vunpack.i.l.bf16 %v1856_v13  ;;  %1786 = vmatpush3.bf16.msra.mxu1 %v1783_v4  ;;  %v1382_v12 = vld [vmem:[%s2429_s8 + $0x8] sm:$0xff]  ;;  %v1383_v13 = vld [vmem:[%s2429_s8 + $0x10] sm:$0xff] }
 0xa9c   :  { %1889 = vpow2.f32 %v1028_v5  ;;  %1788 = vmatprep.subr.bf16.mxu1 %v1787_v11  ;;  %v1381_v5 = vld [vmem:[%s2429_s8] sm:$0xff] }
 0xa9d   :  { %v1771_v16 = vpack.c.bf16 %v1858_v14, %v1857_v15  ;;  %v1791_v14 = vpack.c.bf16 %v1382_v12, %v1381_v5  ;;  %v1384_v15 = vld [vmem:[%s2429_s8 + $0x18] sm:$0xff] }
 0xa9e   :  { %v1132_v37 = vpop.permute.xlu1 %1131 }
 0xa9f   :  { %1772 = vmatprep.subr.bf16.mxu0 %v1771_v16  ;;  %v1152_v43 = vsel %vm335_vm1, %v2266_v44, %v1132_v37  ;;  %1790 = vmatpush3.bf16.msra.mxu1 %v1787_v11 }
 0xaa0   :  { %1774 = vmatpush3.bf16.msra.mxu0 %v1771_v16  ;;  %v1795_v16 = vpack.c.bf16 %v1384_v15, %v1383_v13 }
 0xaa2   :  { %v1138_v38 = vpop.permute.xlu1 %1137 }
 0xaa5   :  { %v1888_v31 = vpop.eup %1887 }
 0xaa6   :  { %v1030_v17 = vsel %vm421_vm3, %v1888_v31, 0.0  ;;  %v1890_v18 = vpop.eup %1889  ;;  %v1140_v40 = vpop.permute.xlu1 %1139 }
 0xaa7   :  { %1031 = vadd.xlane.f32.xlu0 %v1030_v17  ;;  %v1033_v19 = vsel %vm421_vm3, %v1890_v18, 0.0  ;;  %v1154_v47 = vsel %vm421_vm3, %v1152_v43, %v1140_v40  ;;  %v1386_v17 = vld [vmem:[%s2429_s8 + $0x28] sm:$0xff]  ;;  %v1388_v40 = vld [vmem:[%s2429_s8 + $0x38] sm:$0xff] }
 0xaab   :  { %1034 = vadd.xlane.f32.xlu0 %v1033_v19 }
 0xac1   :  { %1129 = vrot.lane.b32.xlu0 %v2293_v25, %s2020_s26  ;;  %v1159_v25 = vld [vmem:[%s2426_s5 + $0x8] sm:$0xff] }
 0xac2   :  { %v1775_v32 = vpack.c.bf16 %v1159_v25, %v1158_v29 }
 0xac4   :  { %1776 = vmatprep.subr.bf16.mxu0 %v1775_v32 }
 0xb34   :  { %v1032_v20 = vpop.xlane.xlu0 %1031 }
 0xb35   :  { %1891 = vrcp.f32 %v1032_v20 }
 0xb38   :  { %v1035_v22 = vpop.xlane.xlu0 %1034 }
 0xb39   :  { %1893 = vrcp.f32 %v1035_v22 }
 0xb3c   :  { %v1130_v39 = vpop.permute.xlu0 %1129 }
 0xb3d   :  { %v1151_v41 = vsel %vm335_vm1, %v2268_v45, %v1130_v39  ;;  %v1165_v45 = vrot.slane %v2193_v23, %v1164_v51  ;;  %v1387_v39 = vld [vmem:[%s2429_s8 + $0x30] sm:$0xff]  ;;  %v1391_v51 = vsub.s32 4, %v2187_v21 }
 0xb3e   :  { %v1153_v50 = vsel %vm421_vm3, %v1151_v41, %v1138_v38  ;;  %v1803_v41 = vpack.c.bf16 %v1388_v40, %v1387_v39 }
 0xb3f   :  { %v1892_v24 = vpop.eup %1891 }
 0xb40   :  { %v1038_v26 = vmul.f32 %v1892_v24, %v1888_v31  ;;  %v1385_v31 = vld [vmem:[%s2429_s8 + $0x20] sm:$0xff]  ;;  %s2033_s8 = smov [#allocation10]  }
 0xb41   :  { %s1484_s29 = sshll.u32 %s2033_s8, 4  ;;  %s1485_s29 = int_to_ptr.vmem [resolvable:$true] %s1484_s29 }
 0xb42   :  { %1675 = vmatprep.mubr.msk.f32.mxu0 %vm421_vm3, %v1038_v26  ;;  %p1992_p5 = scmp.lt.s32.totalorder %s1485_s29, %s1485_s29 }
 0xb43   :  { %v1894_v27 = vpop.eup %1893 }
 0xb44   :  { %v1039_v28 = vmul.f32 %v1894_v27, %v1890_v18  ;;  %v1799_v18 = vpack.c.bf16 %v1386_v17, %v1385_v31  ;;  %v1271_v27 = vsub.s32 7, %v2187_v21 }
 0xb46   :  { %1676 = vmatmul.mubr.msk.f32.vlgmr.msra.gmra.mrb[6].mxu0 %vm421_vm3, %v1039_v28  ;;  %v1272_v29 = vrot.slane %v2193_v23, %v1271_v27 }
 0xb47   :  { %1778 = vmatpush3.bf16.msra.mxu0 %v1775_v32  ;;  %v1528_v32 = vld [vmem:[%s2430_s9 + $0x8] ss:$0 sm:$0xff] }
 0xb48   :  { %1780 = vmatprep.subr.bf16.mxu0 %v1779_v34 }
 0xb4b   :  { %1782 = vmatpush3.bf16.msra.mxu0 %v1779_v34 }
 0xb4c   :  { %1792 = vmatprep.subr.bf16.mxu0 %v1791_v14 }
 0xc19   :  { %v1677_v35 = vpop.f32.mrb[6].mxu0 }
 0xc1a   :  { %1147 = vrot.lane.b32.xlu1 %v1677_v35, %s2032_s3  ;;  %v1118_v36 = vpop.f32.mrb[7].mxu0 }
 0xc1b   :  { %1145 = vrot.lane.b32.xlu0 %v1118_v36, %s2032_s3 }
 0xc8c   :  { %v1148_v42 = vpop.permute.xlu1 %1147 }
 0xc8d   :  { %v1146_v46 = vpop.permute.xlu0 %1145  ;;  %v1157_v49 = vsel %vm1155_vm4, %v1154_v47, %v1148_v42  ;;  %v1529_v42 = vld [vmem:[%s2428_s7] ss:$0 sm:$0xff]  ;;  %s1987_s7 = scalar_lea.vmem %s1485_s29, 256 }
 0xc8e   :  { %v1156_v48 = vsel %vm1155_vm4, %v1153_v50, %v1146_v46  ;;  %p1988_p4 = scmp.ne.s32.totalorder %s1485_s29, %s1987_s7  ;;  %p1993_p6 = scmp.lt.s32.totalorder %s1987_s7, %s1987_s7 }
 0xc8f   :  { %1686 = vmatprep.mubr.msk.f32.mxu0 %vm99_vm0, %v1156_v48 }
 0xc90   :  { %1687 = vmatmul.mubr.msk.f32.vlgmr.msra.gmra.mrb[8].mxu0 %vm99_vm0, %v1157_v49  ;;  %p1994_p7 = por %p1993_p6, %p1992_p5 }
 0xc91   :  { %1794 = vmatpush3.bf16.msra.mxu0 %v1791_v14 }
 0xc92   :  { %1796 = vmatprep.subr.bf16.mxu0 %v1795_v16  ;;  %p1995_p8 = pnand %p1994_p7, %p1988_p4 }
 0xc95   :  { %1798 = vmatpush3.bf16.msra.mxu0 %v1795_v16 }
 0xc96   :  { %1800 = vmatprep.subr.bf16.mxu0 %v1799_v18 }
 0xc99   :  { %1802 = vmatpush3.bf16.msra.mxu0 %v1799_v18 }
 0xc9a   :  { %1804 = vmatprep.subr.bf16.mxu0 %v1803_v41 }
 0xc9d   :  { %1806 = vmatpush3.bf16.msra.mxu0 %v1803_v41 }
 0xd63   :  { %v1688_v53 = vpop.f32.mrb[8].mxu0 }
 0xd64   :  { %v1244_v54 = vadd.f32 %v1688_v53, %v1165_v45  ;;  %v1238_v55 = vpop.f32.mrb[9].mxu0 }
 0xd65   :  { %v1239_v57 = vadd.f32 %v1238_v55, %v1165_v45  ;;  %v1392_v45 = vrot.slane %v2193_v23, %v1391_v51 }
 0xd66   :  { %v2353_v44 = vadd.f32 %v1244_v54, %v2165_v1 }
 0xd67   :  { %v2356_v58 = vadd.f32 %v1239_v57, %v2163_v0 }
 0xd68   :  { %v1252_v59 = vsel %vm99_vm0, %v2353_v44, 0.0 }
 0xd69   :  { %1253 = vadd.xlane.f32.xlu1 %v1252_v59  ;;  %v1249_v60 = vsel %vm99_vm0, %v2356_v58, 0.0 }
 0xd6a   :  { %1250 = vadd.xlane.f32.xlu0 %v1249_v60 }
 0xdf6   :  { %v1254_v61 = vpop.xlane.xlu1 %1253 }
 0xdf7   :  { %v1256_v52 = vmul.f32 0.03125, %v1254_v61  ;;  %v1251_v62 = vpop.xlane.xlu0 %1250 }
 0xdf8   :  { %v1255_v63 = vmul.f32 0.03125, %v1251_v62 }
 0xdf9   :  { %v1258_v2 = vsub.f32 %v2353_v44, %v1256_v52 }
 0xdfa   :  { %v1257_v1 = vsub.f32 %v2356_v58, %v1255_v63 }
 0xdfb   :  { %v1260_v6 = vmul.f32 %v1258_v2, %v1258_v2  ;;  %v1274_v34 = vmul.f32 %v1272_v29, %v1258_v2 }
 0xdfc   :  { %v1259_v3 = vmul.f32 %v1257_v1, %v1257_v1  ;;  %v1273_v25 = vmul.f32 %v1272_v29, %v1257_v1 }
 0xdfd   :  { %v1264_v7 = vsel %vm99_vm0, %v1260_v6, 0.0 }
 0xdfe   :  { %v1261_v0 = vsel %vm99_vm0, %v1259_v3, 0.0 }
 0xdff   :  { %1262 = vadd.xlane.f32.xlu0 %v1261_v0 }
 0xe03   :  { %1265 = vadd.xlane.f32.xlu0 %v1264_v7 }
 0xe8c   :  { %v1263_v19 = vpop.xlane.xlu0 %1262 }
 0xe8d   :  { %v1267_v20 = vmul.f32 0.03125, %v1263_v19 }
 0xe8f   :  { %v1275_v22 = vadd.f32 1e-06, %v1267_v20 }
 0xe90   :  { %v1266_v24 = vpop.xlane.xlu0 %1265 }
 0xe91   :  { %1895 = vrsqrt.f32 %v1275_v22  ;;  %v1268_v26 = vmul.f32 0.03125, %v1266_v24 }
 0xe93   :  { %v1276_v28 = vadd.f32 1e-06, %v1268_v26 }
 0xe95   :  { %1897 = vrsqrt.f32 %v1276_v28 }
 0xe9b   :  { %v1896_v30 = vpop.eup %1895 }
 0xe9c   :  { %v1279_v33 = vmul.f32 %v1896_v30, %v1273_v25 }
 0xe9e   :  { %v1285_v35 = vadd.f32 %v1528_v32, %v1279_v33 }
 0xe9f   :  { %v1898_v36 = vpop.eup %1897 }
 0xea0   :  { %v1280_v37 = vmul.f32 %v1898_v36, %v1274_v34  ;;  %1697 = vmatprep.mubr.msk.f32.mxu1 %vm99_vm0, %v1285_v35 }
 0xea2   :  { %v1286_v38 = vadd.f32 %v1528_v32, %v1280_v37 }
 0xea4   :  { %1698 = vmatmul.mubr.msk.f32.vlgmr.msra.gmra.mrb[12].mxu1 %vm99_vm0, %v1286_v38 }
 0xf77   :  { %v1699_v43 = vpop.f32.mrb[12].mxu1 }
 0xf78   :  { %v1376_v50 = vadd.f32 %v1699_v43, %v1529_v42  ;;  %v1370_v46 = vpop.f32.mrb[13].mxu1 }
 0xf79   :  { %v1371_v47 = vadd.f32 %v1529_v42, %v1370_v46 }
 0xf7a   :  { %v1380_v49 = vmax.f32 %v1376_v50, 0.0 }
 0xf7b   :  { %v1379_v48 = vmax.f32 %v1371_v47, 0.0 }
 0xf7d   :  { %1716 = vmatprep.mubr.msk.f32.mxu0 %vm1393_vm5, %v1379_v48 }
 0xf7e   :  { %1717 = vmatmul.mubr.msk.f32.vlgmr.msra.gmra.mrb[10].mxu0 %vm1393_vm5, %v1380_v49 }
0x1051   :  { %v1718_v53 = vpop.f32.mrb[10].mxu0 }
0x1052   :  { %v1472_v54 = vadd.f32 %v1718_v53, %v1392_v45  ;;  %v1466_v55 = vpop.f32.mrb[11].mxu0 }
0x1053   :  { %v1467_v57 = vadd.f32 %v1466_v55, %v1392_v45 }
0x1054   :  { %v1476_v59 = vadd.f32 %v1472_v54, %v2353_v44 }
0x1055   :  { %v1475_v60 = vadd.f32 %v1467_v57, %v2356_v58 }
0x1056   :  { %1478 = vst.msk [vmem:[#allocation10 + $0x8] sm:$0xff] %vm99_vm0, %v1476_v59 }
0x1057   :  { %1477 = vst.msk [vmem:[#allocation10] sm:$0xff] %vm99_vm0, %v1475_v60 }
0x1058   :  { %1998 = shalt.err (!%p1995_p8)
}
0x1059   :  { %s1999_s0 = scalar_lea.hbm %s2431_s10, 256 }
0x105a   :  { %p2000_p9 = scmp.ne.s32.totalorder %s2431_s10, %s1999_s0  ;;  %p2003_p10 = scmp.lt.u32.totalorder %s1999_s0, %s2431_s10 }
0x105c   :  { %p2005_p11 = pnand %p2003_p10, %p2000_p9 }
0x105e   :  { %2008 = shalt.err (!%p2005_p11)
}
0x105f   :  { %1490 = dma.vmem_to_hbm [thread:$0]  %s1485_s29, 256, %s2431_s10, [#allocation4], %s2019_s25, %s2019_s25, %s2020_s26  }
0x1060   :  { %2015 = dma.done.wait [#allocation4], 256  }
0x1061   :  { %2016 = vsyncadd [#allocation4], 4294967040 }
0x1062   :  { %1494 = vsyncpa [#allocation3], 1 }
0x1063   :  { %1495 = vsyncpa [#allocation6], 1 }
0x1064   :  { %1496 = vsyncpa [#allocation9], 1 }
0x1065   :  { %1497 = vsyncpa [#allocation4], 1 }

</bundles_post_ra>
